<compile_context>
chip_gen: v7x
topology: tpu7x:2x2x1
jax: 0.10.0
libtpu: 0.0.40
codegen_flags: <defaults>
</compile_context>

<pallas_src>
import jax
import jax.numpy as jnp
from jax import lax
from jax.experimental import pallas as pl
from jax.experimental.pallas import tpu as pltpu

IN = 16        # FrozenLake 4x4 one-hot state size
HID = 128      # fc1 hidden width
N_ACT = 4      # number of actions
LANE = 128     # internal lane-dense fc2 width
NEG_INF = -1e30


def policy_kernel(ids_ref, w1_ref, b1_ref, w2_ref, b2_ref, o_ref):
    # ids_ref: (TB, 1) int32 state indices in [0, 16)
    # w1_ref : (16, 128),  b1_ref: (1, 128)
    # w2_ref : (128, 128)  -- columns 4..127 are zero
    # b2_ref : (1, 128)    -- columns 4..127 are -1e30 (masks padded logits)
    # o_ref  : (TB, 4)     -- per-state action probabilities
    ids = ids_ref[...]                                            # (TB, 1)

    # One-hot built in-kernel from the indices (fc1 of a one-hot input is a row lookup;
    # the tiny K=16 matmul feeds the MXU directly and avoids any (B,16) f32 input DMA).
    onehot = (ids == lax.broadcasted_iota(jnp.int32, (ids.shape[0], IN), 1)
              ).astype(jnp.float32)                               # (TB, 16)

    # fc1 + ReLU (f32 accumulation).
    h = jnp.dot(onehot, w1_ref[...], preferred_element_type=jnp.float32) + b1_ref[...]
    h = jnp.maximum(h, 0.0)

    # fc2, lane-dense internally; padded lanes get logit -1e30.
    logits = jnp.dot(h, w2_ref[...], preferred_element_type=jnp.float32) + b2_ref[...]

    # Numerically-stable softmax; padded lanes contribute exp(-inf) == 0 to the denom.
    m = jnp.max(logits, axis=-1, keepdims=True)
    e = jnp.exp(logits - m)
    denom = jnp.sum(e, axis=-1, keepdims=True)
    probs = e * pl.reciprocal(denom, approx=False)                # exact: probs sum to 1

    # Store only the 4 valid action lanes (16 B/row of HBM writeback).
    o_ref[...] = probs[:, :N_ACT]


def policy_forward_batched(state_ids, w1, b1, w2p, b2p, *, block_b=2048, min_steps=1):
    """state_ids: (B,) int32 state indices -> (B, 4) per-state action probabilities.

    block_b: max rows per grid step (VMEM use is tiny; 2048 fits every generation).
    min_steps: set to 2 on v7x for large B to shard the batch across both TensorCores
               (dimension_semantics=("parallel",) only helps when the grid has >=2 steps).
    """
    ids = jnp.asarray(state_ids, jnp.int32).reshape(-1, 1)
    B = ids.shape[0]

    steps = max(-(-B // block_b), min_steps)          # number of grid steps
    tb = (-(-B // steps) + 7) // 8 * 8                # balanced tile, multiple of 8
    b_pad = steps * tb
    if b_pad != B:
        ids = jnp.pad(ids, ((0, b_pad - B), (0, 0)))  # pad with state 0; rows sliced off

    out = pl.pallas_call(
        policy_kernel,
        out_shape=jax.ShapeDtypeStruct((b_pad, N_ACT), jnp.float32),
        grid=(steps,),
        in_specs=[
            pl.BlockSpec((tb, 1), lambda i: (i, 0)),       # state ids: tiled over batch
            pl.BlockSpec((IN, HID), lambda i: (0, 0)),     # fc1 W: VMEM-resident
            pl.BlockSpec((1, HID), lambda i: (0, 0)),      # fc1 b: VMEM-resident
            pl.BlockSpec((HID, LANE), lambda i: (0, 0)),   # fc2 W (padded): resident
            pl.BlockSpec((1, LANE), lambda i: (0, 0)),     # fc2 b (padded): resident
        ],
        out_specs=pl.BlockSpec((tb, N_ACT), lambda i: (i, 0)),
        compiler_params=pltpu.CompilerParams(
            # Shards the batch across TensorCores on v7x when steps >= 2; no-op otherwise.
            dimension_semantics=("parallel",),
        ),
    )(ids, w1, b1, w2p, b2p)

    return out if b_pad == B else out[:B]


def policy_forward(x, w1, b1, w2, b2):
    """Single-state forward matching torch Policy.forward: (16,) -> (4,).

    Plain XLA on purpose: a B=1 Pallas dispatch cannot amortize its overhead for a
    ~40 KFLOP forward. Batch rollouts and use policy_forward_batched instead.
    """
    h = jnp.maximum(x @ w1 + b1[0], 0.0)
    return jax.nn.softmax(h @ w2 + b2[0], axis=0)


def init_params(key):
    """Deterministic init matching nn.Linear shapes (uniform +-1/sqrt(fan_in))."""
    k1, k2, k3, k4 = jax.random.split(key, 4)
    lim1 = 1.0 / jnp.sqrt(16.0)
    lim2 = 1.0 / jnp.sqrt(128.0)
    # Stored transposed relative to torch: (in, out).
    w1 = jax.random.uniform(k1, (IN, HID), jnp.float32, -lim1, lim1)
    b1 = jax.random.uniform(k2, (1, HID), jnp.float32, -lim1, lim1)
    w2 = jax.random.uniform(k3, (HID, N_ACT), jnp.float32, -lim2, lim2)
    b2 = jax.random.uniform(k4, (1, N_ACT), jnp.float32, -lim2, lim2)
    return w1, b1, w2, b2


def pad_fc2(w2, b2):
    """One-time host-side padding of fc2 to lane-dense (128-wide) form."""
    w2p = jnp.zeros((HID, LANE), jnp.float32).at[:, :N_ACT].set(w2)
    b2p = jnp.full((1, LANE), NEG_INF, jnp.float32).at[:, :N_ACT].set(b2)
    return w2p, b2p


if __name__ == "__main__":
    key = jax.random.PRNGKey(0)
    pkey, skey = jax.random.split(key)
    w1, b1, w2, b2 = init_params(pkey)
    w2p, b2p = pad_fc2(w2, b2)

    # Small batch (non-multiple of 8 to exercise batch padding); single grid step.
    B = 6
    states = jax.random.randint(skey, (B,), 0, 16)
    probs = jax.block_until_ready(policy_forward_batched(states, w1, b1, w2p, b2p))

    # Pure-JAX reference with UNPADDED weights (per-state softmax over 4 logits,
    # identical to torch softmax(dim=0) on each single-state forward).
    x = jax.nn.one_hot(states, IN, dtype=jnp.float32)
    h_ref = jnp.maximum(x @ w1 + b1, 0.0)
    ref = jax.nn.softmax(h_ref @ w2 + b2, axis=-1)

    assert probs.shape == (B, N_ACT)
    assert jnp.allclose(probs, ref, atol=2e-3, rtol=2e-3)        # matmul-precision slack
    assert jnp.allclose(jnp.sum(probs, axis=-1), 1.0, atol=1e-5)  # exact reciprocal

    # Multi-grid-step path (exercises the balanced tile math + row padding).
    B2 = 300
    states2 = jax.random.randint(jax.random.PRNGKey(1), (B2,), 0, 16)
    probs2 = jax.block_until_ready(
        policy_forward_batched(states2, w1, b1, w2p, b2p, block_b=128))
    x2 = jax.nn.one_hot(states2, IN, dtype=jnp.float32)
    ref2 = jax.nn.softmax(jnp.maximum(x2 @ w1 + b1, 0.0) @ w2 + b2, axis=-1)
    assert probs2.shape == (B2, N_ACT)
    assert jnp.allclose(probs2, ref2, atol=2e-3, rtol=2e-3)

    # Single-state path (the original torch Policy.forward signature) — plain XLA.
    p1 = jax.block_until_ready(policy_forward(x[0], w1, b1, w2, b2))
    assert p1.shape == (N_ACT,)
    assert jnp.allclose(p1, ref[0], atol=2e-3, rtol=2e-3)

    # TODO(synk): train_net (Adam update, discounted-return loss) and Categorical
    # sampling are host/XLA-side training logic, not part of the forward kernel.

    print("KERNEL_OK")
</pallas_src>

<mosaic_0001>
module attributes {stable_mosaic.version = 11 : i64} {
  func.func @policy_kernel(%arg0: i32, %arg1: memref<8x1xi32, #tpu.memory_space<vmem>>, %arg2: memref<16x128xf32, #tpu.memory_space<vmem>>, %arg3: memref<1x128xf32, #tpu.memory_space<vmem>>, %arg4: memref<128x128xf32, #tpu.memory_space<vmem>>, %arg5: memref<1x128xf32, #tpu.memory_space<vmem>>, %arg6: memref<8x4xf32, #tpu.memory_space<vmem>>) attributes {dimension_semantics = [#tpu.dimension_semantics<parallel>], iteration_bounds = array<i64: 1>, scalar_prefetch = 0 : i64, scratch_operands = 0 : i64, tpu.core_type = #tpu.core_type<tc>, window_params = [{transform_indices = @transform_0, window_bounds = array<i64: 8, 1>}, {pipeline_mode = #tpu.pipeline_mode<synchronous>, transform_indices = @transform_1, window_bounds = array<i64: 16, 128>}, {pipeline_mode = #tpu.pipeline_mode<synchronous>, transform_indices = @transform_2, window_bounds = array<i64: 1, 128>}, {pipeline_mode = #tpu.pipeline_mode<synchronous>, transform_indices = @transform_3, window_bounds = array<i64: 128, 128>}, {pipeline_mode = #tpu.pipeline_mode<synchronous>, transform_indices = @transform_4, window_bounds = array<i64: 1, 128>}, {transform_indices = @transform_5, window_bounds = array<i64: 8, 4>}]} {
    %c0 = arith.constant 0 : index
    %c0_0 = arith.constant 0 : index
    %0 = vector.load %arg1[%c0, %c0_0] : memref<8x1xi32, #tpu.memory_space<vmem>>, vector<8x1xi32>
    %1 = tpu.iota {dimensions = array<i32: 1>} : vector<8x16xi32>
    %2 = vector.broadcast %0 : vector<8x1xi32> to vector<8x16xi32>
    %3 = arith.cmpi eq, %2, %1 : vector<8x16xi32>
    %4 = arith.extui %3 : vector<8x16xi1> to vector<8x16xi32>
    %5 = arith.sitofp %4 : vector<8x16xi32> to vector<8x16xf32>
    %c0_1 = arith.constant 0 : index
    %c0_2 = arith.constant 0 : index
    %6 = vector.load %arg2[%c0_1, %c0_2] : memref<16x128xf32, #tpu.memory_space<vmem>>, vector<16x128xf32>
    %cst = arith.constant dense<0.000000e+00> : vector<8x128xf32>
    %7 = tpu.matmul %5, %6, %cst {dimension_numbers = #tpu.dot_dimension_numbers<[1], [0], [0], [1], [0, 0, 1, 1], [], []>} : vector<8x16xf32>, vector<16x128xf32>, vector<8x128xf32> -> vector<8x128xf32>
    %c0_3 = arith.constant 0 : index
    %c0_4 = arith.constant 0 : index
    %8 = vector.load %arg3[%c0_3, %c0_4] : memref<1x128xf32, #tpu.memory_space<vmem>>, vector<1x128xf32>
    %9 = vector.broadcast %8 : vector<1x128xf32> to vector<8x128xf32>
    %10 = arith.addf %7, %9 : vector<8x128xf32>
    %cst_5 = arith.constant 0.000000e+00 : f32
    %11 = vector.broadcast %cst_5 : f32 to vector<8x128xf32>
    %12 = arith.maximumf %10, %11 : vector<8x128xf32>
    %c0_6 = arith.constant 0 : index
    %c0_7 = arith.constant 0 : index
    %13 = vector.load %arg4[%c0_6, %c0_7] : memref<128x128xf32, #tpu.memory_space<vmem>>, vector<128x128xf32>
    %cst_8 = arith.constant dense<0.000000e+00> : vector<8x128xf32>
    %14 = tpu.matmul %12, %13, %cst_8 {dimension_numbers = #tpu.dot_dimension_numbers<[1], [0], [0], [1], [0, 0, 1, 1], [], []>} : vector<8x128xf32>, vector<128x128xf32>, vector<8x128xf32> -> vector<8x128xf32>
    %c0_9 = arith.constant 0 : index
    %c0_10 = arith.constant 0 : index
    %15 = vector.load %arg5[%c0_9, %c0_10] : memref<1x128xf32, #tpu.memory_space<vmem>>, vector<1x128xf32>
    %16 = vector.broadcast %15 : vector<1x128xf32> to vector<8x128xf32>
    %17 = arith.addf %14, %16 : vector<8x128xf32>
    %cst_11 = arith.constant dense<0xFF800000> : vector<8xf32>
    %18 = vector.multi_reduction <maximumf>, %17, %cst_11 [1] : vector<8x128xf32> to vector<8xf32>
    %19 = vector.shape_cast %18 : vector<8xf32> to vector<8x1xf32>
    %20 = vector.broadcast %19 : vector<8x1xf32> to vector<8x128xf32>
    %21 = arith.subf %17, %20 : vector<8x128xf32>
    %22 = math.exp %21 : vector<8x128xf32>
    %cst_12 = arith.constant dense<0.000000e+00> : vector<8xf32>
    %23 = vector.multi_reduction <add>, %22, %cst_12 [1] : vector<8x128xf32> to vector<8xf32>
    %24 = vector.shape_cast %23 : vector<8xf32> to vector<8x1xf32>
    %25 = tpu.reciprocal %24 : vector<8x1xf32> -> vector<8x1xf32>
    %26 = vector.broadcast %25 : vector<8x1xf32> to vector<8x128xf32>
    %27 = arith.mulf %22, %26 : vector<8x128xf32>
    %28 = vector.extract_strided_slice %27 {offsets = [0, 0], sizes = [8, 4], strides = [1, 1]} : vector<8x128xf32> to vector<8x4xf32>
    %c0_13 = arith.constant 0 : index
    %c0_14 = arith.constant 0 : index
    %29 = vector.load %arg6[%c0_13, %c0_14] : memref<8x4xf32, #tpu.memory_space<vmem>>, vector<8x4xf32>
    tpu.vector_store %arg6[%c0_13, %c0_14], %28 {strides = array<i32>} : memref<8x4xf32, #tpu.memory_space<vmem>>, vector<8x4xf32>,
    return
  }
  func.func @transform_0(%arg0: i32) -> (i32, i32) {
    %c0_i32 = arith.constant 0 : i32
    %c0_i32_0 = arith.constant 0 : i32
    return %arg0, %c0_i32 : i32, i32
  }
  func.func @transform_1(%arg0: i32) -> (i32, i32) {
    %c0_i32 = arith.constant 0 : i32
    %c0_i32_0 = arith.constant 0 : i32
    %c0_i32_1 = arith.constant 0 : i32
    return %c0_i32, %c0_i32_0 : i32, i32
  }
  func.func @transform_2(%arg0: i32) -> (i32, i32) {
    %c0_i32 = arith.constant 0 : i32
    %c0_i32_0 = arith.constant 0 : i32
    %c0_i32_1 = arith.constant 0 : i32
    return %c0_i32, %c0_i32_0 : i32, i32
  }
  func.func @transform_3(%arg0: i32) -> (i32, i32) {
    %c0_i32 = arith.constant 0 : i32
    %c0_i32_0 = arith.constant 0 : i32
    %c0_i32_1 = arith.constant 0 : i32
    return %c0_i32, %c0_i32_0 : i32, i32
  }
  func.func @transform_4(%arg0: i32) -> (i32, i32) {
    %c0_i32 = arith.constant 0 : i32
    %c0_i32_0 = arith.constant 0 : i32
    %c0_i32_1 = arith.constant 0 : i32
    return %c0_i32, %c0_i32_0 : i32, i32
  }
  func.func @transform_5(%arg0: i32) -> (i32, i32) {
    %c0_i32 = arith.constant 0 : i32
    %c0_i32_0 = arith.constant 0 : i32
    return %arg0, %c0_i32 : i32, i32
  }
}

</mosaic_0001>

<bundles_post_ra>
// kernel: tpu_custom_call.1
= control target key start
LH: loop header
LB: loop body
LE: loop exit
PB: predicated region body
PF: predicated region fallthrough
CT: control target
= control target key end

     0   :  { %10 = vsyncpa [#allocation3], 0  ;;  %s479_s0 = inlined_call_operand.vmem [shape: s32[8,1], index: 0, kind: input, shape index: {}]   ;;  %s480_s1 = inlined_call_operand.hbm [shape: f32[16,128], index: 1, kind: input, shape index: {}]   ;;  %s481_s2 = inlined_call_operand.vmem [shape: f32[1,128], index: 2, kind: input, shape index: {}]   ;;  %s482_s3 = inlined_call_operand.hbm [shape: f32[128,128], index: 3, kind: input, shape index: {}]   ;;  %s483_s4 = inlined_call_operand.vmem [shape: f32[1,128], index: 4, kind: input, shape index: {}]   ;;  %s484_s5 = inlined_call_operand.vmem [shape: f32[8,4], index: 5, kind: output, shape index: {}]  }
   0x1   :  { %11 = vsyncpa [#allocation5], 0  ;;  %s405_s18 = smov [#allocation2]   ;;  %s357_s22 = scalar_lea.hbm %s480_s1, 256 }
   0x2   :  { %s19_s19 = sshll.u32 %s405_s18, 4  ;;  %p358_p0 = scmp.ne.s32.totalorder %s480_s1, %s357_s22  ;;  %s20_s19 = int_to_ptr.vmem [resolvable:$true] %s19_s19 }
   0x3   :  { %p361_p1 = scmp.lt.u32.totalorder %s357_s22, %s480_s1 }
   0x5   :  { %p363_p2 = pnand %p361_p1, %p358_p0 }
   0x7   :  { %366 = shalt.err (!%p363_p2)
}
   0x8   :  { %s367_s27 = scalar_lea.vmem %s20_s19, 256  ;;  %p372_p4 = scmp.lt.s32.totalorder %s20_s19, %s20_s19 }
   0x9   :  { %p368_p3 = scmp.ne.s32.totalorder %s20_s19, %s367_s27  ;;  %p373_p5 = scmp.lt.s32.totalorder %s367_s27, %s367_s27 }
   0xb   :  { %p374_p6 = por %p373_p5, %p372_p4 }
   0xd   :  { %p375_p7 = pnand %p374_p6, %p368_p3 }
   0xf   :  { %378 = shalt.err (!%p375_p7)
}
  0x10   :  { %s406_s28 = smov 128   ;;  %s407_s29 = smov 8  }
  0x11   :  { %25 = dma.hbm_to_vmem [thread:$0]  %s480_s1, 256, %s20_s19, [#allocation3], %s406_s28, %s406_s28, %s407_s29  }
  0x12   :  { %s408_s7 = smov [#allocation4]   ;;  %s379_s11 = scalar_lea.hbm %s482_s3, 2048 }
  0x13   :  { %s33_s8 = sshll.u32 %s408_s7, 4  ;;  %p380_p8 = scmp.ne.s32.totalorder %s482_s3, %s379_s11  ;;  %s34_s8 = int_to_ptr.vmem [resolvable:$true] %s33_s8 }
  0x14   :  { %p383_p9 = scmp.lt.u32.totalorder %s379_s11, %s482_s3 }
  0x16   :  { %p385_p10 = pnand %p383_p9, %p380_p8 }
  0x18   :  { %388 = shalt.err (!%p385_p10)
}
  0x19   :  { %s389_s16 = scalar_lea.vmem %s34_s8, 2048  ;;  %p394_p12 = scmp.lt.s32.totalorder %s34_s8, %s34_s8 }
  0x1a   :  { %p390_p11 = scmp.ne.s32.totalorder %s34_s8, %s389_s16  ;;  %p395_p13 = scmp.lt.s32.totalorder %s389_s16, %s389_s16 }
  0x1c   :  { %p396_p0 = por %p395_p13, %p394_p12 }
  0x1e   :  { %p397_p1 = pnand %p396_p0, %p390_p11 }
  0x20   :  { %400 = shalt.err (!%p397_p1)
}
  0x21   :  { %39 = dma.hbm_to_vmem [thread:$0]  %s482_s3, 2048, %s34_s8, [#allocation5], %s406_s28, %s406_s28, %s407_s29  }
  0x22   :  { %401 = dma.done.wait [#allocation3], 256  }
  0x23   :  { %402 = vsyncadd [#allocation3], 4294967040 }
  0x24   :  { %403 = dma.done.wait [#allocation5], 2048  }
  0x25   :  { %404 = vsyncadd [#allocation5], 4294965248  ;;  %v409_v0 = vmov 0   ;;  %v410_v1 = vmov 0.0|0.0   ;;  %v48_v2 = vld [vmem:[%s479_s0] sm:$0xff]  ;;  %v58_v4 = vld [vmem:[#allocation2 + $0x8] sm:$0xff]  ;;  %v49_v28 = vlaneseq }
  0x26   :  { %352 = vset.pattern.permute.xlu0 %v409_v0  ;;  %317 = vmatprep.subr.bf16.mxu0 %v410_v1  ;;  %v57_v3 = vld [vmem:[#allocation2] sm:$0xff]  ;;  %vm411_vm0 = vmmov 0   ;;  %v412_v6 = vmov 0.0   ;;  %v141_v7 = vld [vmem:[#allocation4] sm:$0xff]  ;;  %v142_v8 = vld [vmem:[#allocation4 + $0x8] sm:$0xff]  ;;  %vm66_vm1 = vcmask 130048  }
  0x27   :  { %320 = vmatprep.subr.bf16.mxu1 %v410_v1  ;;  %52 = vperm.xlu0 %352, %v48_v2   ;;  %v318_v5 = vpack.c.bf16 %v58_v4, %v57_v3  ;;  %v143_v9 = vld [vmem:[#allocation4 + $0x10] sm:$0xff]  ;;  %v321_v10 = vpack.c.bf16 %v142_v8, %v141_v7  ;;  %v144_v11 = vld [vmem:[#allocation4 + $0x18] sm:$0xff]  ;;  %v145_v13 = vld [vmem:[#allocation4 + $0x20] sm:$0xff]  ;;  %v50_v29 = vand.u32 127, %v49_v28  ;;  %vm243_vm3 = vcmask 31744  }
  0x28   :  { %279 = vmatprep.mubr.msk.f32.mxu0 %vm411_vm0, %v412_v6  ;;  %314 = vmatprep.mubr.msk.f32.mxu1 %vm411_vm0, %v412_v6  ;;  %v324_v12 = vpack.c.bf16 %v144_v11, %v143_v9  ;;  %v146_v14 = vld [vmem:[#allocation4 + $0x28] sm:$0xff]  ;;  %v147_v16 = vld [vmem:[#allocation4 + $0x30] sm:$0xff]  ;;  %v148_v17 = vld [vmem:[#allocation4 + $0x38] sm:$0xff] }
  0x29   :  { %319 = vmatpush3.bf16.msra.mxu0 %v318_v5  ;;  %322 = vmatpush3.bf16.msra.mxu1 %v321_v10  ;;  %v327_v15 = vpack.c.bf16 %v146_v14, %v145_v13  ;;  %v330_v18 = vpack.c.bf16 %v148_v17, %v147_v16  ;;  %v149_v19 = vld [vmem:[#allocation4 + $0x40] sm:$0xff]  ;;  %v150_v20 = vld [vmem:[#allocation4 + $0x48] sm:$0xff]  ;;  %v151_v22 = vld [vmem:[#allocation4 + $0x50] sm:$0xff] }
  0x2a   :  { %323 = vmatprep.subr.bf16.mxu1 %v410_v1  ;;  %v333_v21 = vpack.c.bf16 %v150_v20, %v149_v19  ;;  %v152_v23 = vld [vmem:[#allocation4 + $0x58] sm:$0xff]  ;;  %v153_v25 = vld [vmem:[#allocation4 + $0x60] sm:$0xff]  ;;  %v154_v26 = vld [vmem:[#allocation4 + $0x68] sm:$0xff] }
  0x2b   :  { %v336_v24 = vpack.c.bf16 %v152_v23, %v151_v22  ;;  %v339_v27 = vpack.c.bf16 %v154_v26, %v153_v25  ;;  %v155_v32 = vld [vmem:[#allocation4 + $0x70] sm:$0xff]  ;;  %v156_v33 = vld [vmem:[#allocation4 + $0x78] sm:$0xff] }
  0x2c   :  { %v342_v34 = vpack.c.bf16 %v156_v33, %v155_v32  ;;  %v252_v35 = vld [vmem:[%s481_s2] ss:$0 sm:$0xff] }
  0x2d   :  { %325 = vmatpush3.bf16.msra.mxu1 %v324_v12  ;;  %v254_v40 = vld [vmem:[%s483_s4] ss:$0 sm:$0xff] }
  0x2e   :  { %326 = vmatprep.subr.bf16.mxu1 %v410_v1 }
  0x31   :  { %328 = vmatpush3.bf16.msra.mxu1 %v327_v15 }
  0x32   :  { %329 = vmatprep.subr.bf16.mxu1 %v410_v1 }
  0x35   :  { %331 = vmatpush3.bf16.msra.mxu1 %v330_v18 }
  0x36   :  { %332 = vmatprep.subr.bf16.mxu1 %v410_v1 }
  0x39   :  { %334 = vmatpush3.bf16.msra.mxu1 %v333_v21 }
  0x3a   :  { %335 = vmatprep.subr.bf16.mxu1 %v410_v1 }
  0x3d   :  { %337 = vmatpush3.bf16.msra.mxu1 %v336_v24 }
  0x3e   :  { %338 = vmatprep.subr.bf16.mxu1 %v410_v1 }
  0x41   :  { %340 = vmatpush3.bf16.msra.mxu1 %v339_v27 }
  0x42   :  { %341 = vmatprep.subr.bf16.mxu1 %v410_v1 }
  0x45   :  { %343 = vmatpush3.bf16.msra.mxu1 %v342_v34 }
  0xa6   :  { %v53_v30 = vpop.permute.xlu0 %52 }
  0xa7   :  { %vm54_vm2 = vcmp.eq.s32.totalorder %v53_v30, %v50_v29 }
  0xa8   :  { %v251_v31 = vsel %vm54_vm2, 1.0, %v412_v6 }
  0xa9   :  { %280 = vmatmul.mubr.msk.f32.vlgmr.msra.gmra.mrb[0].mxu0 %vm66_vm1, %v251_v31 }
 0x17c   :  { %v136_v36 = vpop.f32.mrb[0].mxu0 }
 0x17d   :  { %v137_v37 = vadd.f32 %v252_v35, %v136_v36  ;;  %v281_v38 = vpop.f32.mrb[1].mxu0 }
 0x17f   :  { %v140_v39 = vmax.f32 %v137_v37, 0.0 }
 0x181   :  { %315 = vmatmul.mubr.f32.vlgmr.msra.gmra.mrb[0].mxu1 %v140_v39 }
 0x254   :  { %v230_v41 = vpop.f32.mrb[0].mxu1 }
 0x255   :  { %v231_v42 = vadd.f32 %v254_v40, %v230_v41  ;;  %v316_v43 = vpop.f32.mrb[1].mxu1 }
 0x257   :  { %234 = vmax.xlane.f32.xlu0 %v231_v42 }
 0x2e4   :  { %v235_v44 = vpop.xlane.xlu0 %234 }
 0x2e5   :  { %v236_v45 = vsub.f32 %v231_v42, %v235_v44 }
 0x2e7   :  { %v237_v46 = vmul.f32 1.442695, %v236_v45 }
 0x2e9   :  { %353 = vpow2.f32 %v237_v46 }
 0x2f3   :  { %v354_v47 = vpop.eup %353 }
 0x2f4   :  { %239 = vadd.xlane.f32.xlu1 %v354_v47 }
 0x381   :  { %v240_v48 = vpop.xlane.xlu1 %239 }
 0x382   :  { %355 = vrcp.f32 %v240_v48 }
 0x38c   :  { %v356_v49 = vpop.eup %355 }
 0x38d   :  { %v242_v50 = vmul.f32 %v356_v49, %v354_v47 }
 0x38f   :  { %244 = vst.msk [vmem:[%s484_s5] sm:$0xff] %vm243_vm3, %v242_v50 }
 0x390   :  { %249 = vsyncpa [#allocation3], 1 }
 0x391   :  { %250 = vsyncpa [#allocation5], 1 }

</bundles_post_ra>
